<compile_context>
chip_gen: v7x
topology: tpu7x:2x2x1
jax: 0.10.0
libtpu: 0.0.40
codegen_flags: <defaults>
</compile_context>

<pallas_src>
import jax
import jax.numpy as jnp
from jax.experimental import pallas as pl
from jax.experimental.pallas import tpu as pltpu

_LANE = 128


def _round_up(x, m):
    return ((x + m - 1) // m) * m


def l2_loss(output, target, *, target_tile_bytes=4 << 20):
    """Pallas implementation of torch.norm(output - target, p=2, dim=1).mean()."""
    assert output.shape == target.shape
    assert output.ndim == 4, "expects NCHW inputs"
    B, C, H, W = output.shape
    HW = H * W
    in_bytes = jnp.dtype(output.dtype).itemsize

    # dtype-aware sublane multiple: 8 (f32), 16 (bf16/f16), 32 (int8/fp8).
    sub_mult = max(8, 32 // in_bytes)

    R = pl.cdiv(HW, _LANE)                 # 128-lane pixel rows
    bytes_per_row = C * _LANE * in_bytes   # bytes per pixel-row per input

    max_rows = (target_tile_bytes // bytes_per_row) // sub_mult * sub_mult
    max_rows = max(sub_mult, max_rows)

    if R <= max_rows:
        if B == 1 and R >= 2 * sub_mult:
            # Keep both v7x TensorCores fed: force >= 2 parallel grid steps.
            block_rows = _round_up(pl.cdiv(R, 2), sub_mult)
        else:
            block_rows = R                 # full extent: always a legal tiling
    else:
        # Rebalanced split: padding per block is < sub_mult rows instead of
        # up to a whole extra block when R is just above a multiple of max_rows.
        num = pl.cdiv(R, max_rows)
        block_rows = _round_up(pl.cdiv(R, num), sub_mult)
    num_sblocks = pl.cdiv(R, block_rows)
    # Only the last spatial block can read past R (unspecified data) -> mask.
    needs_mask = num_sblocks * block_rows > R

    def _prep(x):
        # Lane-dense (R, 128) view; pad at most 127 pixels with zeros.
        # Zero padding contributes 0 to every channel sum -> exact result.
        x = x.reshape(B, C, HW)
        if R * _LANE != HW:
            x = jnp.pad(x, ((0, 0), (0, 0), (0, R * _LANE - HW)))
        return x.reshape(B, C, R, _LANE)

    def kernel(pred_ref, tgt_ref, partial_ref):
        # Tiles are (1, C, block_rows, 128).
        p = pred_ref[0].astype(jnp.float32)      # (C, block_rows, 128)
        t = tgt_ref[0].astype(jnp.float32)
        d = p - t
        # Channel reduction over the leading dim: pure VPU elementwise adds.
        sq_sum = jnp.sum(d * d, axis=0)          # (block_rows, 128)
        norms = jnp.sqrt(sq_sum)                 # per-pixel L2 norm
        if needs_mask:
            s = pl.program_id(1)
            row = jax.lax.broadcasted_iota(jnp.int32, (block_rows, _LANE), 0)
            lane = jax.lax.broadcasted_iota(jnp.int32, (block_rows, _LANE), 1)
            pix = (s * block_rows + row) * _LANE + lane
            norms = jnp.where(pix < HW, norms, 0.0)
        # Reduce rows only; emit a lane-dense (1, 128) partial per grid step.
        partial_ref[...] = jnp.sum(norms, axis=0, keepdims=True).reshape(
            1, 1, 1, _LANE)

    tile_bytes = C * block_rows * _LANE * in_bytes
    # Cover 2 inputs x 2 pipeline buffers plus in-kernel f32 temporaries,
    # capped at the v7x 64 MiB physical-VMEM ceiling.  (For extremely large C
    # a third channel grid axis with a carried accumulator would be needed.)
    vmem_limit = min(max(10 * tile_bytes + (4 << 20), 32 << 20), 64 << 20)

    o4 = _prep(output)
    t4 = _prep(target)

    partials = pl.pallas_call(
        kernel,
        out_shape=jax.ShapeDtypeStruct((B, num_sblocks, 1, _LANE), jnp.float32),
        grid_spec=pltpu.PrefetchScalarGridSpec(
            num_scalar_prefetch=0,
            grid=(B, num_sblocks),
            in_specs=[
                pl.BlockSpec((1, C, block_rows, _LANE), lambda b, s: (b, 0, s, 0)),
                pl.BlockSpec((1, C, block_rows, _LANE), lambda b, s: (b, 0, s, 0)),
            ],
            out_specs=pl.BlockSpec((1, 1, 1, _LANE), lambda b, s: (b, s, 0, 0)),
        ),
        compiler_params=pltpu.CompilerParams(
            dimension_semantics=("parallel", "parallel"),
            vmem_limit_bytes=vmem_limit,
        ),
    )(o4, t4)

    # Tiny final reduction + mean in plain JAX; divide by the true B*H*W.
    return jnp.sum(partials, dtype=jnp.float32) / jnp.float32(B * HW)


def _reference(output, target):
    diff = output.astype(jnp.float32) - target.astype(jnp.float32)
    return jnp.mean(jnp.sqrt(jnp.sum(diff * diff, axis=1)))


if __name__ == "__main__":
    key = jax.random.PRNGKey(0)
    k1, k2, k3, k4, k5, k6, k7, k8 = jax.random.split(key, 8)

    # 1) Typical small NCHW shape (exact lane tiling, single spatial block).
    o = jax.random.normal(k1, (2, 4, 16, 16), dtype=jnp.float32)
    t = jax.random.normal(k2, (2, 4, 16, 16), dtype=jnp.float32)
    got = jax.block_until_ready(l2_loss(o, t))
    ref = _reference(o, t)
    assert jnp.allclose(got, ref, rtol=1e-5, atol=1e-5), (got, ref)

    # 2) H*W not a multiple of 128: minimal (<128 pixel) zero-pad path.
    o = jax.random.normal(k3, (2, 3, 5, 7), dtype=jnp.float32)
    t = jax.random.normal(k4, (2, 3, 5, 7), dtype=jnp.float32)
    got = jax.block_until_ready(l2_loss(o, t))
    ref = _reference(o, t)
    assert jnp.allclose(got, ref, rtol=1e-5, atol=1e-5), (got, ref)

    # 3) Multi-spatial-block path, exactly tiled (tiny tile budget -> grid (2,4)).
    o = jax.random.normal(k5, (2, 2, 64, 64), dtype=jnp.float32)
    t = jax.random.normal(k6, (2, 2, 64, 64), dtype=jnp.float32)
    got = jax.block_until_ready(l2_loss(o, t, target_tile_bytes=8192))
    ref = _reference(o, t)
    assert jnp.allclose(got, ref, rtol=1e-5, atol=1e-5), (got, ref)

    # 4) Ragged multi-block path: pad-to-128 + in-kernel masking of OOB rows.
    o = jax.random.normal(k7, (2, 3, 40, 40), dtype=jnp.float32)
    t = jax.random.normal(k8, (2, 3, 40, 40), dtype=jnp.float32)
    got = jax.block_until_ready(l2_loss(o, t, target_tile_bytes=4096))
    ref = _reference(o, t)
    assert jnp.allclose(got, ref, rtol=1e-5, atol=1e-5), (got, ref)

    # 5) bf16 inputs + B == 1: forced 2-way spatial split (dual TensorCore)
    #    with 16-row (packed-dtype legal) block tiling.
    ka, kb = jax.random.split(k1)
    o = jax.random.normal(ka, (1, 2, 64, 128), dtype=jnp.bfloat16)
    t = jax.random.normal(kb, (1, 2, 64, 128), dtype=jnp.bfloat16)
    got = jax.block_until_ready(l2_loss(o, t))
    ref = _reference(o, t)
    assert jnp.allclose(got, ref, rtol=1e-4, atol=1e-4), (got, ref)

    print("KERNEL_OK")
</pallas_src>

<mosaic_0001>
module attributes {stable_mosaic.version = 11 : i64} {
  func.func @kernel(%arg0: i32, %arg1: i32, %arg2: memref<1x4x2x128xf32, #tpu.memory_space<vmem>>, %arg3: memref<1x4x2x128xf32, #tpu.memory_space<vmem>>, %arg4: memref<1x1x1x128xf32, #tpu.memory_space<vmem>>) attributes {dimension_semantics = [#tpu.dimension_semantics<parallel>, #tpu.dimension_semantics<parallel>], iteration_bounds = array<i64: 2, 1>, scalar_prefetch = 0 : i64, scratch_operands = 0 : i64, tpu.core_type = #tpu.core_type<tc>, window_params = [{transform_indices = @transform_0, window_bounds = array<i64: 1, 4, 2, 128>}, {transform_indices = @transform_1, window_bounds = array<i64: 1, 4, 2, 128>}, {transform_indices = @transform_2, window_bounds = array<i64: 1, 1, 1, 128>}]} {
    %c0 = arith.constant 0 : index
    %c0_0 = arith.constant 0 : index
    %c0_1 = arith.constant 0 : index
    %c0_2 = arith.constant 0 : index
    %0 = vector.load %arg2[%c0, %c0_0, %c0_1, %c0_2] : memref<1x4x2x128xf32, #tpu.memory_space<vmem>>, vector<1x4x2x128xf32>
    %1 = vector.shape_cast %0 : vector<1x4x2x128xf32> to vector<4x2x128xf32>
    %c0_3 = arith.constant 0 : index
    %c0_4 = arith.constant 0 : index
    %c0_5 = arith.constant 0 : index
    %c0_6 = arith.constant 0 : index
    %2 = vector.load %arg3[%c0_3, %c0_4, %c0_5, %c0_6] : memref<1x4x2x128xf32, #tpu.memory_space<vmem>>, vector<1x4x2x128xf32>
    %3 = vector.shape_cast %2 : vector<1x4x2x128xf32> to vector<4x2x128xf32>
    %4 = arith.subf %1, %3 : vector<4x2x128xf32>
    %5 = arith.mulf %4, %4 : vector<4x2x128xf32>
    %cst = arith.constant dense<0.000000e+00> : vector<2x128xf32>
    %6 = vector.multi_reduction <add>, %5, %cst [0] : vector<4x2x128xf32> to vector<2x128xf32>
    %7 = math.sqrt %6 : vector<2x128xf32>
    %cst_7 = arith.constant dense<0.000000e+00> : vector<128xf32>
    %8 = vector.multi_reduction <add>, %7, %cst_7 [0] : vector<2x128xf32> to vector<128xf32>
    %9 = vector.shape_cast %8 : vector<128xf32> to vector<1x128xf32>
    %10 = vector.shape_cast %9 : vector<1x128xf32> to vector<1x1x1x128xf32>
    %c0_8 = arith.constant 0 : index
    %c0_9 = arith.constant 0 : index
    %c0_10 = arith.constant 0 : index
    %c0_11 = arith.constant 0 : index
    %11 = vector.load %arg4[%c0_8, %c0_9, %c0_10, %c0_11] : memref<1x1x1x128xf32, #tpu.memory_space<vmem>>, vector<1x1x1x128xf32>
    tpu.vector_store %arg4[%c0_8, %c0_9, %c0_10, %c0_11], %10 {strides = array<i32>} : memref<1x1x1x128xf32, #tpu.memory_space<vmem>>, vector<1x1x1x128xf32>,
    return
  }
  func.func @transform_0(%arg0: i32, %arg1: i32) -> (i32, i32, i32, i32) {
    %c0_i32 = arith.constant 0 : i32
    %c0_i32_0 = arith.constant 0 : i32
    %c0_i32_1 = arith.constant 0 : i32
    return %arg0, %c0_i32, %arg1, %c0_i32_0 : i32, i32, i32, i32
  }
  func.func @transform_1(%arg0: i32, %arg1: i32) -> (i32, i32, i32, i32) {
    %c0_i32 = arith.constant 0 : i32
    %c0_i32_0 = arith.constant 0 : i32
    %c0_i32_1 = arith.constant 0 : i32
    return %arg0, %c0_i32, %arg1, %c0_i32_0 : i32, i32, i32, i32
  }
  func.func @transform_2(%arg0: i32, %arg1: i32) -> (i32, i32, i32, i32) {
    %c0_i32 = arith.constant 0 : i32
    %c0_i32_0 = arith.constant 0 : i32
    %c0_i32_1 = arith.constant 0 : i32
    return %arg0, %arg1, %c0_i32, %c0_i32_0 : i32, i32, i32, i32
  }
}

</mosaic_0001>

<bundles_post_ra>
// kernel: tpu_custom_call.1
= control target key start
LH: loop header
LB: loop body
LE: loop exit
PB: predicated region body
PF: predicated region fallthrough
CT: control target
= control target key end

     0   :  { %7 = vsyncpa [#allocation3], 0  ;;  %s873_s0 = inlined_call_operand.hbm [shape: f32[2,4,2,128], index: 0, kind: input, shape index: {}]   ;;  %s874_s1 = inlined_call_operand.hbm [shape: f32[2,4,2,128], index: 1, kind: input, shape index: {}]   ;;  %s875_s2 = inlined_call_operand.hbm [shape: f32[2,1,1,128], index: 2, kind: output, shape index: {}]  }
   0x1   :  { %9 = vsyncpa [#allocation3 + $0x1], 0 }
   0x2   :  { %10 = vsyncpa [#allocation6], 0 }
   0x3   :  { %12 = vsyncpa [#allocation6 + $0x1], 0 }
   0x4   :  { %13 = vsyncpa [#allocation4], 0 }
   0x5   :  { %15 = vsyncpa [#allocation4 + $0x1], 0  ;;  %s633_s9 = smov 0   ;;  %s635_s10 = smov 0  }
   0x6   :  { %s637_s11 = smov 0   ;;  %s639_s12 = smov 0  }
   0x7   :  { %s641_s13 = smov 0   ;;  %s643_s14 = smov 0  }
   0x8 LB: > { %s376_s15 = sadd.s32 4294967295, %s611_s14   ;;  %s377_s16 = sadd.s32 4294967294, %s611_s14   ;;  %s611_s14 = sphi %s643_s14, %s21_s14   ;;  %s607_s13 = sphi %s641_s13, %s893_s13   ;;  %s603_s12 = sphi %s639_s12, %s892_s12   ;;  %s599_s11 = sphi %s637_s11, %s891_s11   ;;  %s595_s10 = sphi %s635_s10, %s890_s10   ;;  %s591_s9 = sphi %s633_s9, %s889_s9  }
   0x9   : > { %s33_s17 = sadd.s32 1, %s607_s13  ;;  %s42_s18 = sadd.s32 1, %s599_s11 }
   0xa   : > { %p35_p0 = scmp.ge.s32.totalorder %s33_s17, 2  ;;  %p49_p1 = scmp.ne.s32.totalorder %s599_s11, %s595_s10 }
   0xb   : > { %p50_p2 = scmp.eq.s32.totalorder %s611_s14, 0  ;;  %p55_p3 = scmp.ne.s32.totalorder %s595_s10, %s591_s9 }
   0xc   : > { %s895_s17 = smov (%p35_p0, %s33_s17), 0  ;;  %p56_p5 = scmp.eq.s32.totalorder %s376_s15, 0 }
   0xd   : > { %p674_p4 = por %p50_p2, %p49_p1  ;;  %s37_s20 = ssub.s32 %s607_s13, %s895_s17 }
   0xe   : > { %p109_p6 = scmp.eq.s32.totalorder %s376_s15, 1  ;;  %p40_p7 = scmp.eq.s32.totalorder %s37_s20, 0 }
   0xf   : > { %p680_p8 = por %p56_p5, %p55_p3  ;;  %p115_p10 = scmp.eq.s32.totalorder %s377_s16, 1 }
  0x10   : > { %p684_p9 = por %p109_p6, %p49_p1  ;;  %p411_p13 = scmp.lt.s32.totalorder %s611_s14, 2 }
  0x11   : > { %s879_s21 = scalar_select %p680_p8, 1, 0 }
  0x12   : > { %s880_s22 = scalar_select %p684_p9, 1, 0 }
  0x13   : > { %s689_s23 = scalar_select %p40_p7, %s599_s11, %s42_s18  }
  0x14   : > { %p691_p11 = por %p115_p10, %p55_p3  ;;  %s698_s25 = sand.u32 1, %s599_s11  }
  0x15   : > { %s380_s26 = sshll.u32 %s698_s25, 3  ;;  %s392_s27 = sshll.u32 %s607_s13, 7 }
  0x16   : > { %s881_s24 = scalar_select %p691_p11, 1, 0 }
  0x17   : > { %s707_s30 = scalar_lea.hbm %s873_s0, %s392_s27  ;;  %s139_s3 = scalar_lea.vmem [#allocation2], %s380_s26 }
  0x18   : > { %s147_s4 = sshll.u32 %s139_s3, 4  ;;  %p715_p0 = pnand %p411_p13, %p674_p4  ;;  %s711_s4 = int_to_ptr.vmem [resolvable:$true] %s147_s4 }
  0x19   : > { %s136_s6 = scalar_lea.sflag [#allocation3], %s698_s25  ;;  %s465_s7 = scalar_lea.hbm %s707_s30, 128 }
  0x1a   : > { %p466_p2 = scmp.ne.s32.totalorder %s707_s30, %s465_s7  ;;  %p467_p3 = pneg %p715_p0 }
  0x1b   : > { %s470_s16 = scalar_lea.hbm %s873_s0, 256  ;;  %p471_p4 = scmp.lt.u32.totalorder %s707_s30, %s873_s0 }
  0x1c   : > { %p468_p5 = pnand %p467_p3, %p466_p2  ;;  %p472_p7 = scmp.lt.u32.totalorder %s470_s16, %s465_s7 }
  0x1d   : > { %p474_p13 = scmp.lt.u32.totalorder %s465_s7, %s707_s30 }
  0x1e   : > { %p469_p6 = pneg %p468_p5  ;;  %p473_p10 = por %p472_p7, %p471_p4 }
  0x20   : > { %p475_p12 = por %p474_p13, %p473_p10 }
  0x22   : > { %p476_p1 = pnand %p475_p12, %p469_p6 }
  0x24   : > { %479 = shalt.err (!%p476_p1)
}
  0x25   : > { %s480_s20 = scalar_lea.vmem %s711_s4, 128  ;;  %s613_s28 = smov [#allocation2]  }
  0x26   : > { %p481_p2 = scmp.ne.s32.totalorder %s711_s4, %s480_s20  ;;  %s485_s29 = sshll.u32 %s613_s28, 4  ;;  %s486_s29 = int_to_ptr.vmem [resolvable:$false] %s485_s29 }
  0x27   : > { %s487_s3 = scalar_lea.vmem %s486_s29, 256  ;;  %p488_p9 = scmp.lt.s32.totalorder %s711_s4, %s486_s29 }
  0x28   : > { %p483_p5 = pnand %p481_p2, %p467_p3  ;;  %p489_p4 = scmp.lt.s32.totalorder %s487_s3, %s480_s20 }
  0x2a   : > { %p484_p11 = pneg %p483_p5  ;;  %p490_p7 = por %p489_p4, %p488_p9 }
  0x2c   : > { %p491_p10 = pnand %p490_p7, %p484_p11 }
  0x2e   : > { %494 = shalt.err (!%p491_p10)
}
  0x2f   : > { %s614_s7 = smov 32   ;;  %s615_s8 = smov 2  }
  0x30   : > { %403 = dma.hbm_to_vmem [thread:$0]  (!%p715_p0), %s707_s30, 128, %s711_s4, %s136_s6, %s614_s7, %s614_s7, %s615_s8  }
  0x31   : > { %p177_p9 = scmp.lt.s32.totalorder %s611_s14, 3  ;;  %s757_s18 = scalar_lea.hbm %s874_s1, %s392_s27 }
  0x32   : > { %p883_p11 = scmp.ge.s32.totalorder %s611_s14, 1  ;;  %s161_s20 = scalar_lea.vmem [#allocation5], %s380_s26 }
  0x33   : > { %s169_s28 = sshll.u32 %s161_s20, 4  ;;  %s158_s30 = scalar_lea.sflag [#allocation6], %s698_s25  ;;  %s767_s28 = int_to_ptr.vmem [resolvable:$true] %s169_s28 }
  0x34   : > { %p761_p12 = pnand %p883_p11, %p177_p9  ;;  %s495_s4 = scalar_lea.hbm %s757_s18, 128 }
  0x35   : > { %p496_p1 = scmp.ne.s32.totalorder %s757_s18, %s495_s4  ;;  %s500_s29 = scalar_lea.hbm %s874_s1, 256 }
  0x36   : > { %p501_p2 = scmp.lt.u32.totalorder %s757_s18, %s874_s1  ;;  %p502_p5 = scmp.lt.u32.totalorder %s500_s29, %s495_s4 }
  0x37   : > { %p498_p6 = pnand %p496_p1, %p467_p3  ;;  %p504_p7 = scmp.lt.u32.totalorder %s495_s4, %s757_s18 }
  0x38   : > { %p503_p4 = por %p502_p5, %p501_p2 }
  0x39   : > { %p499_p13 = pneg %p498_p6 }
  0x3a   : > { %p505_p10 = por %p504_p7, %p503_p4 }
  0x3c   : > { %p506_p9 = pnand %p505_p10, %p499_p13 }
  0x3e   : > { %509 = shalt.err (!%p506_p9)
}
  0x3f   : > { %s510_s26 = scalar_lea.vmem %s767_s28, 128  ;;  %s616_s16 = smov [#allocation5]  }
  0x40   : > { %p511_p11 = scmp.ne.s32.totalorder %s767_s28, %s510_s26  ;;  %s515_s20 = sshll.u32 %s616_s16, 4  ;;  %s516_s20 = int_to_ptr.vmem [resolvable:$false] %s515_s20 }
  0x41   : > { %s517_s27 = scalar_lea.vmem %s516_s20, 256  ;;  %p518_p8 = scmp.lt.s32.totalorder %s767_s28, %s516_s20 }
  0x42   : > { %p513_p1 = pnand %p511_p11, %p467_p3  ;;  %p519_p2 = scmp.lt.s32.totalorder %s517_s27, %s510_s26 }
  0x44   : > { %p514_p6 = pneg %p513_p1  ;;  %p520_p5 = por %p519_p2, %p518_p8 }
  0x46   : > { %p521_p4 = pnand %p520_p5, %p514_p6 }
  0x48   : > { %524 = shalt.err (!%p521_p4)
}
  0x49   : > { %406 = dma.hbm_to_vmem [thread:$0]  (!%p715_p0), %s757_s18, 128, %s767_s28, %s158_s30, %s614_s7, %s614_s7, %s615_s8  }
  0x4a   : > { %181 = sbr.rel (%p761_p12) target bundleno = 140 (0x8c), region = 28  ;;  %s801_s4 = sand.u32 (!%p761_p12), 1, %s595_s10  }
  0x4b   : > { %s387_s6 = sshll.u32 (!%p761_p12), %s801_s4, 3  ;;  %s184_s29 = scalar_lea.sflag (!%p761_p12), [#allocation3], %s801_s4 }
  0x4c   : > { %s187_s5 = scalar_lea.vmem (!%p761_p12), [#allocation2], %s387_s6  ;;  %p885_p8 = scmp.ne.s32.totalorder (!%p761_p12), %s879_s21, 0 }
  0x51   : > { %578 = dma.done.wait (%p885_p8), %s184_s29, 128  }
  0x52   : > { %580 = vsyncadd (%p885_p8), %s184_s29, 4294967168  ;;  %s193_s25 = scalar_lea.sflag [#allocation6], %s801_s4  ;;  %s196_s7 = scalar_lea.vmem [#allocation5], %s387_s6 }
  0x53   : > { %582 = dma.done.wait (%p885_p8), %s193_s25, 128  }
  0x54   : > { %584 = vsyncadd (%p885_p8), %s193_s25, 4294967168  ;;  %v221_v0 = vld [vmem:[%s187_s5] sm:$0x3]  ;;  %v222_v1 = vld [vmem:[%s187_s5 + $0x2] sm:$0x3]  ;;  %vm237_vm0 = vcmask 1041408  }
  0x55   : > { %v223_v2 = vld [vmem:[%s187_s5 + $0x4] sm:$0x3]  ;;  %v224_v3 = vld [vmem:[%s187_s5 + $0x6] sm:$0x3]  ;;  %v225_v4 = vld [vmem:[%s196_s7] sm:$0x3] }
  0x56   : > { %v226_v5 = vld [vmem:[%s196_s7 + $0x2] sm:$0x3]  ;;  %v227_v6 = vld [vmem:[%s196_s7 + $0x4] sm:$0x3]  ;;  %v228_v7 = vld [vmem:[%s196_s7 + $0x6] sm:$0x3]  ;;  %v229_v8 = vsub.f32 %v221_v0, %v225_v4 }
  0x57   : > { %v230_v9 = vsub.f32 %v222_v1, %v226_v5  ;;  %v231_v10 = vsub.f32 %v223_v2, %v227_v6  ;;  %v232_v11 = vsub.f32 %v224_v3, %v228_v7  ;;  %s220_s21 = scalar_lea.vmem [#allocation7], %s801_s4  ;;  %s389_s18 = sshll.u32 %s603_s12, 4 }
  0x58   : > { %v233_v12 = vmul.f32 %v229_v8, %v229_v8  ;;  %s274_s8 = sshll.u32 %s220_s21, 4  ;;  %s826_s30 = scalar_lea.hbm %s875_s2, %s389_s18  ;;  %s821_s8 = int_to_ptr.vmem [resolvable:$true] %s274_s8 }
  0x59   : > { %v234_v13 = vmul.f32 %v230_v9, %v230_v9  ;;  %v235_v14 = vmul.f32 %v231_v10, %v231_v10  ;;  %v236_v15 = vmul.f32 %v232_v11, %v232_v11  ;;  %s261_s3 = scalar_lea.sflag [#allocation4], %s801_s4  ;;  %s525_s15 = scalar_lea.vmem %s821_s8, 16 }
  0x5a   : > { %v238_v16 = vsel %vm237_vm0, %v233_v12, 0.0  ;;  %p526_p0 = scmp.ne.s32.totalorder %s821_s8, %s525_s15  ;;  %p886_p3 = scmp.ne.s32.totalorder %s880_s22, 0 }
  0x5b   : > { %v239_v17 = vsel %vm237_vm0, %v234_v13, 0.0  ;;  %v241_v19 = vsel %vm237_vm0, %v235_v14, 0.0  ;;  %v243_v20 = vsel %vm237_vm0, %v236_v15, 0.0  ;;  %s617_s12 = smov [#allocation7]  }
  0x5c   : > { %v240_v18 = vadd.f32 %v239_v17, %v238_v16  ;;  %p527_p12 = pnand %p526_p0, %p886_p3  ;;  %s529_s26 = sshll.u32 %s617_s12, 4  ;;  %s530_s26 = int_to_ptr.vmem [resolvable:$false] %s529_s26 }
  0x5d   : > { %s531_s16 = scalar_lea.vmem %s530_s26, 32  ;;  %p532_p7 = scmp.lt.s32.totalorder %s821_s8, %s530_s26 }
  0x5e   : > { %v242_v21 = vadd.f32 %v241_v19, %v240_v18  ;;  %p528_p13 = pneg %p527_p12  ;;  %p533_p10 = scmp.lt.s32.totalorder %s531_s16, %s525_s15 }
  0x60   : > { %v244_v22 = vadd.f32 %v243_v20, %v242_v21  ;;  %p534_p9 = por %p533_p10, %p532_p7 }
  0x62   : > { %463 = vrsqrt.f32 %v244_v22  ;;  %vm247_vm1 = vcmp.eq.f32.partialorder %v244_v22, inf  ;;  %v250_v24 = vand.u32 2147483648, %v244_v22  ;;  %vm249_vm2 = vcmp.eq.f32.partialorder %v244_v22, 0.0  ;;  %p535_p11 = pnand %p534_p9, %p528_p13 }
  0x6c   : > { %v464_v23 = vpop.eup %463 }
  0x6d   : > { %v246_v25 = vmul.f32 %v464_v23, %v244_v22 }
  0x6f   : > { %v248_v26 = vsel %vm247_vm1, %v244_v22, %v246_v25 }
  0x70   : > { %v251_v27 = vsel %vm249_vm2, %v250_v24, %v248_v26 }
  0x71   : > { %v252_v28 = vsel %vm237_vm0, %v251_v27, 0.0 }
  0x72   : > { %v253_v29 = vrot.slane %v252_v28, 4 }
  0x74   : > { %v254_v30 = vadd.f32 %v253_v29, %v252_v28 }
  0x76   : > { %v255_v31 = vrot.slane %v254_v30, 2 }
  0x78   : > { %v256_v32 = vadd.f32 %v255_v31, %v254_v30 }
  0x7a   : > { %v257_v33 = vrot.slane %v256_v32, 1 }
  0x7c   : > { %v258_v34 = vadd.f32 %v257_v33, %v256_v32 }
  0x7e   : > { %259 = vst [vmem:[%s220_s21] sm:$0x1] %v258_v34 }
  0x7f   : > { %538 = shalt.err (!%p535_p11)
}
  0x80   : > { %s539_s20 = scalar_lea.hbm %s826_s30, 16  ;;  %s543_s6 = scalar_lea.hbm %s875_s2, 32 }
  0x81   : > { %p540_p1 = scmp.ne.s32.totalorder %s826_s30, %s539_s20  ;;  %p544_p5 = scmp.lt.u32.totalorder %s826_s30, %s875_s2 }
  0x82   : > { %p545_p4 = scmp.lt.u32.totalorder %s543_s6, %s539_s20  ;;  %p547_p0 = scmp.lt.u32.totalorder %s539_s20, %s826_s30 }
  0x83   : > { %p541_p6 = pnand %p540_p1, %p886_p3 }
  0x84   : > { %p546_p8 = por %p545_p4, %p544_p5 }
  0x85   : > { %p542_p2 = pneg %p541_p6 }
  0x86   : > { %p548_p12 = por %p547_p0, %p546_p8 }
  0x88   : > { %p549_p13 = pnand %p548_p12, %p542_p2 }
  0x8a   : > { %552 = shalt.err (!%p549_p13)
}
  0x8b   : > { %398 = dma.vmem_to_hbm [thread:$0]  (%p886_p3), %s821_s8, 16, %s826_s30, %s261_s3  }
  0x8c PF: > { %s286_s25 = sand.u32 1, %s591_s9   ;;  %p887_p7 = scmp.ne.s32.totalorder %s881_s24, 0 }
  0x8d   : > { %p888_p10 = scmp.ge.s32.totalorder %s611_s14, 2  ;;  %s287_s7 = scalar_lea.sflag [#allocation4], %s286_s25 }
  0x8f   : > { %p408_p9 = pnand %p888_p10, %p887_p7 }
  0x91   : > { %586 = dma.done.wait (!%p408_p9), %s287_s7, 16  }
  0x92   : > { %588 = vsyncadd (!%p408_p9), %s287_s7, 4294967280  ;;  %s21_s14 = sadd.s32 1, %s611_s14   ;;  %s889_s9 = smov %s595_s10 }
  0x93   : > { %p18_p11 = scmp.ge.s32.totalorder %s21_s14, 4   ;;  %s890_s10 = smov %s599_s11 }
  0x94   : > { %s891_s11 = smov %s689_s23  ;;  %s892_s12 = smov %s607_s13 }
  0x95   : > { %s893_s13 = smov %s895_s17  ;;  %20 = sbr.rel (!%p18_p11) target bundleno = 8 (0x8), region = 86 }
  0x9c   :  { %291 = vsyncpa [#allocation3], 1 }
  0x9d   :  { %293 = vsyncpa [#allocation3 + $0x1], 1 }
  0x9e   :  { %294 = vsyncpa [#allocation6], 1 }
  0x9f   :  { %296 = vsyncpa [#allocation6 + $0x1], 1 }
  0xa0   :  { %297 = vsyncpa [#allocation4], 1 }
  0xa1   :  { %299 = vsyncpa [#allocation4 + $0x1], 1 }

</bundles_post_ra>
